<compile_context>
chip_gen: v7x
topology: tpu7x:2x2x1
jax: 0.10.0
libtpu: 0.0.40
codegen_flags: <defaults>
</compile_context>

<pallas_src>
import functools

import jax
import jax.numpy as jnp
import numpy as np
from jax.experimental import pallas as pl
from jax.experimental.pallas import tpu as pltpu

_LANE = 128   # vreg lane width
_SUB = 8      # vreg sublane count (f32)


def _round_up(n, m):
    return ((n + m - 1) // m) * m


def _pad_to(a, shape):
    pads = [(0, t - s) for s, t in zip(a.shape, shape)]
    if all(p == (0, 0) for p in pads):
        return a            # avoid a no-op pad (extra HBM round trip)
    return jnp.pad(a, pads)


def _device_kind():
    try:
        return jax.devices()[0].device_kind.lower()
    except Exception:
        return ""


def _default_epilogue_dtype():
    """bf16 VALU exists on v6e / v7x; keep the f32 epilogue on v5e and older."""
    kind = _device_kind()
    if any(tag in kind for tag in ("v6", "v7", "7x")):
        return jnp.bfloat16
    return jnp.float32


def _vmem_budget_bytes():
    kind = _device_kind()
    if "v7" in kind or "7x" in kind:
        return 48 * 1024 * 1024      # v7x: 64 MiB physical per TC
    return 96 * 1024 * 1024          # v5e / v6e: 128 MiB physical


# ----------------------------------------------------------------------------
# Kernel
# ----------------------------------------------------------------------------
def _make_fused_mlp_kernel(num_layers):
    """Kernel refs: x_ref, (w_ref, b_ref) * num_layers, o_ref."""
    def kernel(*refs):
        x_ref = refs[0]
        o_ref = refs[-1]
        h = x_ref[...]                                   # native-dtype tile
        for li in range(num_layers):                     # statically unrolled
            w_ref = refs[1 + 2 * li]
            b_ref = refs[2 + 2 * li]
            # MXU matmul: bf16 operands, f32 accumulation.
            y = jnp.dot(h.astype(w_ref.dtype), w_ref[...],
                        preferred_element_type=jnp.float32)
            # Bias + ReLU epilogue in the bias dtype (bf16 on v6e/v7x, f32 on
            # v5e).  Zero-padded lanes stay exactly 0, so padding never leaks.
            h = jnp.maximum(y.astype(b_ref.dtype) + b_ref[...],
                            jnp.zeros((), b_ref.dtype))
        o_ref[...] = h.astype(o_ref.dtype)               # lane-dense store
    return kernel


# ----------------------------------------------------------------------------
# One-time parameter preparation (hoisted out of the jitted forward)
# ----------------------------------------------------------------------------
def prepare_swiprednn_params(params, in_dim, *, compute_dtype=jnp.bfloat16,
                             epilogue_dtype=None):
    """Pad N (lane) dims to 128 and cast once; K dims are never 128-padded."""
    if epilogue_dtype is None:
        epilogue_dtype = _default_epilogue_dtype()
    dims = [int(in_dim)] + [int(w.shape[1]) for w, _ in params]
    n_dims = tuple(_round_up(d, _LANE) for d in dims[1:])        # padded N dims
    k_dims = (int(in_dim),) + n_dims[:-1]                        # true K chain
    flat = []
    for li, (w, b) in enumerate(params):
        wp = _pad_to(w, (k_dims[li], n_dims[li])).astype(compute_dtype)
        bp = _pad_to(b.reshape(1, -1), (1, n_dims[li])).astype(epilogue_dtype)
        flat += [wp, bp]
    return flat, tuple(dims), k_dims, n_dims


# ----------------------------------------------------------------------------
# Forward
# ----------------------------------------------------------------------------
def swiprednn_forward(x, flat_params, *, dims, k_dims, n_dims, tile_b=None,
                      out_dtype=jnp.float32, single_buffer_params=True):
    B = x.shape[0]
    num_layers = len(dims) - 1
    assert x.shape[1] == dims[0]

    # --- batch tile: big (amortize ~0.35us/step pipeline overhead) but keep
    #     >= 2 grid steps when possible so both v7x TensorCores get work.
    if tile_b is None:
        half = _round_up(pl.cdiv(_round_up(B, _SUB), 2), _SUB)
        TB = max(_SUB, min(512, half))
    else:
        TB = max(_SUB, _round_up(min(tile_b, _round_up(B, _SUB)), _SUB))

    x_itm = x.dtype.itemsize
    out_itm = jnp.dtype(out_dtype).itemsize
    param_bufs = 1 if single_buffer_params else 2

    def vmem_needed(tb):
        n = 2 * tb * dims[0] * x_itm                      # x tiles (2 buffers)
        n += 2 * tb * n_dims[-1] * out_itm                # out tiles (2 buffers)
        n += param_bufs * sum(int(p.size) * p.dtype.itemsize for p in flat_params)
        return n

    budget = _vmem_budget_bytes()
    headroom = 8 * 1024 * 1024                            # internal scratch etc.
    while TB > _SUB and vmem_needed(TB) + headroom > budget:
        TB = max(_SUB, _round_up(TB // 2, _SUB))

    Bp = _round_up(B, TB)
    xp = _pad_to(x, (Bp, dims[0]))      # native dtype, no feature padding
    grid = (Bp // TB,)

    # --- block specs ---------------------------------------------------------
    resident = pl.Buffered(1) if single_buffer_params else None
    in_specs = [pl.BlockSpec((TB, dims[0]), lambda i: (i, 0))]
    for li in range(num_layers):
        in_specs.append(pl.BlockSpec((k_dims[li], n_dims[li]), lambda i: (0, 0),
                                     pipeline_mode=resident))
        in_specs.append(pl.BlockSpec((1, n_dims[li]), lambda i: (0, 0),
                                     pipeline_mode=resident))
    out_spec = pl.BlockSpec((TB, n_dims[-1]), lambda i: (i, 0))

    flops = 2 * Bp * sum(k_dims[i] * n_dims[i] for i in range(num_layers))
    bytes_accessed = (Bp * dims[0] * x_itm
                      + sum(int(p.size) * p.dtype.itemsize for p in flat_params)
                      + Bp * n_dims[-1] * out_itm)
    vmem_limit = int(min(budget, max(vmem_needed(TB) + headroom, 32 * 1024 * 1024)))

    out_padded = pl.pallas_call(
        _make_fused_mlp_kernel(num_layers),
        out_shape=jax.ShapeDtypeStruct((Bp, n_dims[-1]), out_dtype),
        grid=grid,
        in_specs=in_specs,
        out_specs=out_spec,
        compiler_params=pltpu.CompilerParams(
            dimension_semantics=("parallel",),            # megacore batch split
            vmem_limit_bytes=vmem_limit),
        cost_estimate=pl.CostEstimate(
            flops=int(flops), transcendentals=0,
            bytes_accessed=int(bytes_accessed)),
    )(xp, *flat_params)

    return out_padded[:B, :dims[-1]]


# ----------------------------------------------------------------------------
# Init + reference
# ----------------------------------------------------------------------------
def init_swiprednn_params(key, in_dim, layer_sizes, dtype=jnp.float32):
    """Deterministic init mimicking torch.nn.Linear default U(-1/sqrt(fan_in), .).
    Weights stored (in_features, out_features): y = x @ W + b."""
    dims = [in_dim] + list(layer_sizes)
    params = []
    for i in range(1, len(dims)):
        d_in, d_out = dims[i - 1], dims[i]
        key, kw, kb = jax.random.split(key, 3)
        bound = 1.0 / np.sqrt(d_in)
        w = jax.random.uniform(kw, (d_in, d_out), dtype, -bound, bound)
        b = jax.random.uniform(kb, (d_out,), dtype, -bound, bound)
        params.append((w, b))
    return params


def _reference_forward(x, params, compute_dtype=jnp.bfloat16):
    """Pure-JAX reference mirroring the kernel's dtype strategy
    (bf16 matmul operands, f32 accumulate, bias + ReLU)."""
    h = x.astype(jnp.float32)
    for w, b in params:
        y = (h.astype(compute_dtype).astype(jnp.float32)
             @ w.astype(compute_dtype).astype(jnp.float32)) + b.astype(jnp.float32)
        h = jnp.maximum(y, 0.0)
    return h


if __name__ == "__main__":
    key = jax.random.PRNGKey(0)
    k_in, k_params = jax.random.split(key)

    # Module-consistent shapes: (batch, in_dim) input, layer_sizes=[64, 128, 32]
    # => input_layer 32->64, layers 64->128, 128->32. Batch 256 so the auto
    # tile picks TB=128 and grid=(2,) (double-buffering + megacore engage).
    batch, in_dim = 256, 32
    layer_sizes = [64, 128, 32]

    x = jax.random.normal(k_in, (batch, in_dim), jnp.float32)
    params = init_swiprednn_params(k_params, in_dim, layer_sizes)

    # One-time (outside the jitted forward): pad N dims to 128, cast to bf16.
    flat_params, dims, k_dims, n_dims = prepare_swiprednn_params(params, in_dim)

    fwd = jax.jit(functools.partial(
        swiprednn_forward, dims=dims, k_dims=k_dims, n_dims=n_dims))
    try:
        out = jax.block_until_ready(fwd(x, flat_params))
    except Exception:
        # Portability guard: if this JAX build rejects single-buffer
        # pipeline_mode=pl.Buffered(1) hints on pallas_call inputs, retry with
        # default double-buffered resident params (identical semantics).
        fwd = jax.jit(functools.partial(
            swiprednn_forward, dims=dims, k_dims=k_dims, n_dims=n_dims,
            single_buffer_params=False))
        out = jax.block_until_ready(fwd(x, flat_params))

    ref = _reference_forward(x, params)
    np.testing.assert_allclose(np.asarray(out), np.asarray(ref),
                               rtol=2e-2, atol=2e-2)
    assert out.shape == (batch, layer_sizes[-1])

    print("KERNEL_OK")
</pallas_src>

<mosaic_0001>
module attributes {stable_mosaic.version = 11 : i64} {
  func.func @kernel(%arg0: i32, %arg1: memref<128x32xf32, #tpu.memory_space<vmem>>, %arg2: memref<32x128xbf16, #tpu.memory_space<vmem>>, %arg3: memref<1x128xf32, #tpu.memory_space<vmem>>, %arg4: memref<128x128xbf16, #tpu.memory_space<vmem>>, %arg5: memref<1x128xf32, #tpu.memory_space<vmem>>, %arg6: memref<128x128xbf16, #tpu.memory_space<vmem>>, %arg7: memref<1x128xf32, #tpu.memory_space<vmem>>, %arg8: memref<128x128xf32, #tpu.memory_space<vmem>>) attributes {dimension_semantics = [#tpu.dimension_semantics<parallel>], iteration_bounds = array<i64: 2>, scalar_prefetch = 0 : i64, scratch_operands = 0 : i64, tpu.core_type = #tpu.core_type<tc>, window_params = [{transform_indices = @transform_0, window_bounds = array<i64: 128, 32>}, {pipeline_mode = #tpu.pipeline_mode<synchronous>, transform_indices = @transform_1, window_bounds = array<i64: 32, 128>}, {pipeline_mode = #tpu.pipeline_mode<synchronous>, transform_indices = @transform_2, window_bounds = array<i64: 1, 128>}, {pipeline_mode = #tpu.pipeline_mode<synchronous>, transform_indices = @transform_3, window_bounds = array<i64: 128, 128>}, {pipeline_mode = #tpu.pipeline_mode<synchronous>, transform_indices = @transform_4, window_bounds = array<i64: 1, 128>}, {pipeline_mode = #tpu.pipeline_mode<synchronous>, transform_indices = @transform_5, window_bounds = array<i64: 128, 128>}, {pipeline_mode = #tpu.pipeline_mode<synchronous>, transform_indices = @transform_6, window_bounds = array<i64: 1, 128>}, {transform_indices = @transform_7, window_bounds = array<i64: 128, 128>}]} {
    %c0 = arith.constant 0 : index
    %c0_0 = arith.constant 0 : index
    %0 = vector.load %arg1[%c0, %c0_0] : memref<128x32xf32, #tpu.memory_space<vmem>>, vector<128x32xf32>
    %1 = arith.truncf %0 : vector<128x32xf32> to vector<128x32xbf16>
    %c0_1 = arith.constant 0 : index
    %c0_2 = arith.constant 0 : index
    %2 = vector.load %arg2[%c0_1, %c0_2] : memref<32x128xbf16, #tpu.memory_space<vmem>>, vector<32x128xbf16>
    %cst = arith.constant dense<0.000000e+00> : vector<128x128xf32>
    %3 = tpu.matmul %1, %2, %cst {dimension_numbers = #tpu.dot_dimension_numbers<[1], [0], [0], [1], [0, 0, 1, 1], [], []>} : vector<128x32xbf16>, vector<32x128xbf16>, vector<128x128xf32> -> vector<128x128xf32>
    %c0_3 = arith.constant 0 : index
    %c0_4 = arith.constant 0 : index
    %4 = vector.load %arg3[%c0_3, %c0_4] : memref<1x128xf32, #tpu.memory_space<vmem>>, vector<1x128xf32>
    %5 = vector.broadcast %4 : vector<1x128xf32> to vector<128x128xf32>
    %6 = arith.addf %3, %5 : vector<128x128xf32>
    %cst_5 = arith.constant 0.000000e+00 : f32
    %7 = vector.broadcast %cst_5 : f32 to vector<128x128xf32>
    %8 = arith.maximumf %6, %7 : vector<128x128xf32>
    %9 = arith.truncf %8 : vector<128x128xf32> to vector<128x128xbf16>
    %c0_6 = arith.constant 0 : index
    %c0_7 = arith.constant 0 : index
    %10 = vector.load %arg4[%c0_6, %c0_7] : memref<128x128xbf16, #tpu.memory_space<vmem>>, vector<128x128xbf16>
    %cst_8 = arith.constant dense<0.000000e+00> : vector<128x128xf32>
    %11 = tpu.matmul %9, %10, %cst_8 {dimension_numbers = #tpu.dot_dimension_numbers<[1], [0], [0], [1], [0, 0, 1, 1], [], []>} : vector<128x128xbf16>, vector<128x128xbf16>, vector<128x128xf32> -> vector<128x128xf32>
    %c0_9 = arith.constant 0 : index
    %c0_10 = arith.constant 0 : index
    %12 = vector.load %arg5[%c0_9, %c0_10] : memref<1x128xf32, #tpu.memory_space<vmem>>, vector<1x128xf32>
    %13 = vector.broadcast %12 : vector<1x128xf32> to vector<128x128xf32>
    %14 = arith.addf %11, %13 : vector<128x128xf32>
    %cst_11 = arith.constant 0.000000e+00 : f32
    %15 = vector.broadcast %cst_11 : f32 to vector<128x128xf32>
    %16 = arith.maximumf %14, %15 : vector<128x128xf32>
    %17 = arith.truncf %16 : vector<128x128xf32> to vector<128x128xbf16>
    %c0_12 = arith.constant 0 : index
    %c0_13 = arith.constant 0 : index
    %18 = vector.load %arg6[%c0_12, %c0_13] : memref<128x128xbf16, #tpu.memory_space<vmem>>, vector<128x128xbf16>
    %cst_14 = arith.constant dense<0.000000e+00> : vector<128x128xf32>
    %19 = tpu.matmul %17, %18, %cst_14 {dimension_numbers = #tpu.dot_dimension_numbers<[1], [0], [0], [1], [0, 0, 1, 1], [], []>} : vector<128x128xbf16>, vector<128x128xbf16>, vector<128x128xf32> -> vector<128x128xf32>
    %c0_15 = arith.constant 0 : index
    %c0_16 = arith.constant 0 : index
    %20 = vector.load %arg7[%c0_15, %c0_16] : memref<1x128xf32, #tpu.memory_space<vmem>>, vector<1x128xf32>
    %21 = vector.broadcast %20 : vector<1x128xf32> to vector<128x128xf32>
    %22 = arith.addf %19, %21 : vector<128x128xf32>
    %cst_17 = arith.constant 0.000000e+00 : f32
    %23 = vector.broadcast %cst_17 : f32 to vector<128x128xf32>
    %24 = arith.maximumf %22, %23 : vector<128x128xf32>
    %c0_18 = arith.constant 0 : index
    %c0_19 = arith.constant 0 : index
    %25 = vector.load %arg8[%c0_18, %c0_19] : memref<128x128xf32, #tpu.memory_space<vmem>>, vector<128x128xf32>
    tpu.vector_store %arg8[%c0_18, %c0_19], %24 {strides = array<i32>} : memref<128x128xf32, #tpu.memory_space<vmem>>, vector<128x128xf32>,
    return
  }
  func.func @transform_0(%arg0: i32) -> (i32, i32) {
    %c0_i32 = arith.constant 0 : i32
    %c0_i32_0 = arith.constant 0 : i32
    return %arg0, %c0_i32 : i32, i32
  }
  func.func @transform_1(%arg0: i32) -> (i32, i32) {
    %c0_i32 = arith.constant 0 : i32
    %c0_i32_0 = arith.constant 0 : i32
    %c0_i32_1 = arith.constant 0 : i32
    return %c0_i32, %c0_i32_0 : i32, i32
  }
  func.func @transform_2(%arg0: i32) -> (i32, i32) {
    %c0_i32 = arith.constant 0 : i32
    %c0_i32_0 = arith.constant 0 : i32
    %c0_i32_1 = arith.constant 0 : i32
    return %c0_i32, %c0_i32_0 : i32, i32
  }
  func.func @transform_3(%arg0: i32) -> (i32, i32) {
    %c0_i32 = arith.constant 0 : i32
    %c0_i32_0 = arith.constant 0 : i32
    %c0_i32_1 = arith.constant 0 : i32
    return %c0_i32, %c0_i32_0 : i32, i32
  }
  func.func @transform_4(%arg0: i32) -> (i32, i32) {
    %c0_i32 = arith.constant 0 : i32
    %c0_i32_0 = arith.constant 0 : i32
    %c0_i32_1 = arith.constant 0 : i32
    return %c0_i32, %c0_i32_0 : i32, i32
  }
  func.func @transform_5(%arg0: i32) -> (i32, i32) {
    %c0_i32 = arith.constant 0 : i32
    %c0_i32_0 = arith.constant 0 : i32
    %c0_i32_1 = arith.constant 0 : i32
    return %c0_i32, %c0_i32_0 : i32, i32
  }
  func.func @transform_6(%arg0: i32) -> (i32, i32) {
    %c0_i32 = arith.constant 0 : i32
    %c0_i32_0 = arith.constant 0 : i32
    %c0_i32_1 = arith.constant 0 : i32
    return %c0_i32, %c0_i32_0 : i32, i32
  }
  func.func @transform_7(%arg0: i32) -> (i32, i32) {
    %c0_i32 = arith.constant 0 : i32
    %c0_i32_0 = arith.constant 0 : i32
    return %arg0, %c0_i32 : i32, i32
  }
}

module attributes {stable_mosaic.version = 11 : i64} {
  func.func @kernel(%arg0: i32, %arg1: memref<128x32xf32, #tpu.memory_space<vmem>>, %arg2: memref<32x128xbf16, #tpu.memory_space<vmem>>, %arg3: memref<1x128xf32, #tpu.memory_space<vmem>>, %arg4: memref<128x128xbf16, #tpu.memory_space<vmem>>, %arg5: memref<1x128xf32, #tpu.memory_space<vmem>>, %arg6: memref<128x128xbf16, #tpu.memory_space<vmem>>, %arg7: memref<1x128xf32, #tpu.memory_space<vmem>>, %arg8: memref<128x128xf32, #tpu.memory_space<vmem>>) attributes {dimension_semantics = [#tpu.dimension_semantics<parallel>], iteration_bounds = array<i64: 2>, scalar_prefetch = 0 : i64, scratch_operands = 0 : i64, tpu.core_type = #tpu.core_type<tc>, window_params = [{transform_indices = @transform_0, window_bounds = array<i64: 128, 32>}, {pipeline_mode = #tpu.pipeline_mode<synchronous>, transform_indices = @transform_1, window_bounds = array<i64: 32, 128>}, {pipeline_mode = #tpu.pipeline_mode<synchronous>, transform_indices = @transform_2, window_bounds = array<i64: 1, 128>}, {pipeline_mode = #tpu.pipeline_mode<synchronous>, transform_indices = @transform_3, window_bounds = array<i64: 128, 128>}, {pipeline_mode = #tpu.pipeline_mode<synchronous>, transform_indices = @transform_4, window_bounds = array<i64: 1, 128>}, {pipeline_mode = #tpu.pipeline_mode<synchronous>, transform_indices = @transform_5, window_bounds = array<i64: 128, 128>}, {pipeline_mode = #tpu.pipeline_mode<synchronous>, transform_indices = @transform_6, window_bounds = array<i64: 1, 128>}, {transform_indices = @transform_7, window_bounds = array<i64: 128, 128>}]} {
    %c0 = arith.constant 0 : index
    %c0_0 = arith.constant 0 : index
    %0 = vector.load %arg1[%c0, %c0_0] : memref<128x32xf32, #tpu.memory_space<vmem>>, vector<128x32xf32>
    %1 = arith.truncf %0 : vector<128x32xf32> to vector<128x32xbf16>
    %c0_1 = arith.constant 0 : index
    %c0_2 = arith.constant 0 : index
    %2 = vector.load %arg2[%c0_1, %c0_2] : memref<32x128xbf16, #tpu.memory_space<vmem>>, vector<32x128xbf16>
    %cst = arith.constant dense<0.000000e+00> : vector<128x128xf32>
    %3 = tpu.matmul %1, %2, %cst {dimension_numbers = #tpu.dot_dimension_numbers<[1], [0], [0], [1], [0, 0, 1, 1], [], []>} : vector<128x32xbf16>, vector<32x128xbf16>, vector<128x128xf32> -> vector<128x128xf32>
    %c0_3 = arith.constant 0 : index
    %c0_4 = arith.constant 0 : index
    %4 = vector.load %arg3[%c0_3, %c0_4] : memref<1x128xf32, #tpu.memory_space<vmem>>, vector<1x128xf32>
    %5 = vector.broadcast %4 : vector<1x128xf32> to vector<128x128xf32>
    %6 = arith.addf %3, %5 : vector<128x128xf32>
    %cst_5 = arith.constant 0.000000e+00 : f32
    %7 = vector.broadcast %cst_5 : f32 to vector<128x128xf32>
    %8 = arith.maximumf %6, %7 : vector<128x128xf32>
    %9 = arith.truncf %8 : vector<128x128xf32> to vector<128x128xbf16>
    %c0_6 = arith.constant 0 : index
    %c0_7 = arith.constant 0 : index
    %10 = vector.load %arg4[%c0_6, %c0_7] : memref<128x128xbf16, #tpu.memory_space<vmem>>, vector<128x128xbf16>
    %cst_8 = arith.constant dense<0.000000e+00> : vector<128x128xf32>
    %11 = tpu.matmul %9, %10, %cst_8 {dimension_numbers = #tpu.dot_dimension_numbers<[1], [0], [0], [1], [0, 0, 1, 1], [], []>} : vector<128x128xbf16>, vector<128x128xbf16>, vector<128x128xf32> -> vector<128x128xf32>
    %c0_9 = arith.constant 0 : index
    %c0_10 = arith.constant 0 : index
    %12 = vector.load %arg5[%c0_9, %c0_10] : memref<1x128xf32, #tpu.memory_space<vmem>>, vector<1x128xf32>
    %13 = vector.broadcast %12 : vector<1x128xf32> to vector<128x128xf32>
    %14 = arith.addf %11, %13 : vector<128x128xf32>
    %cst_11 = arith.constant 0.000000e+00 : f32
    %15 = vector.broadcast %cst_11 : f32 to vector<128x128xf32>
    %16 = arith.maximumf %14, %15 : vector<128x128xf32>
    %17 = arith.truncf %16 : vector<128x128xf32> to vector<128x128xbf16>
    %c0_12 = arith.constant 0 : index
    %c0_13 = arith.constant 0 : index
    %18 = vector.load %arg6[%c0_12, %c0_13] : memref<128x128xbf16, #tpu.memory_space<vmem>>, vector<128x128xbf16>
    %cst_14 = arith.constant dense<0.000000e+00> : vector<128x128xf32>
    %19 = tpu.matmul %17, %18, %cst_14 {dimension_numbers = #tpu.dot_dimension_numbers<[1], [0], [0], [1], [0, 0, 1, 1], [], []>} : vector<128x128xbf16>, vector<128x128xbf16>, vector<128x128xf32> -> vector<128x128xf32>
    %c0_15 = arith.constant 0 : index
    %c0_16 = arith.constant 0 : index
    %20 = vector.load %arg7[%c0_15, %c0_16] : memref<1x128xf32, #tpu.memory_space<vmem>>, vector<1x128xf32>
    %21 = vector.broadcast %20 : vector<1x128xf32> to vector<128x128xf32>
    %22 = arith.addf %19, %21 : vector<128x128xf32>
    %cst_17 = arith.constant 0.000000e+00 : f32
    %23 = vector.broadcast %cst_17 : f32 to vector<128x128xf32>
    %24 = arith.maximumf %22, %23 : vector<128x128xf32>
    %c0_18 = arith.constant 0 : index
    %c0_19 = arith.constant 0 : index
    %25 = vector.load %arg8[%c0_18, %c0_19] : memref<128x128xf32, #tpu.memory_space<vmem>>, vector<128x128xf32>
    tpu.vector_store %arg8[%c0_18, %c0_19], %24 {strides = array<i32>} : memref<128x128xf32, #tpu.memory_space<vmem>>, vector<128x128xf32>,
    return
  }
  func.func @transform_0(%arg0: i32) -> (i32, i32) {
    %c0_i32 = arith.constant 0 : i32
    %c0_i32_0 = arith.constant 0 : i32
    return %arg0, %c0_i32 : i32, i32
  }
  func.func @transform_1(%arg0: i32) -> (i32, i32) {
    %c0_i32 = arith.constant 0 : i32
    %c0_i32_0 = arith.constant 0 : i32
    %c0_i32_1 = arith.constant 0 : i32
    return %c0_i32, %c0_i32_0 : i32, i32
  }
  func.func @transform_2(%arg0: i32) -> (i32, i32) {
    %c0_i32 = arith.constant 0 : i32
    %c0_i32_0 = arith.constant 0 : i32
    %c0_i32_1 = arith.constant 0 : i32
    return %c0_i32, %c0_i32_0 : i32, i32
  }
  func.func @transform_3(%arg0: i32) -> (i32, i32) {
    %c0_i32 = arith.constant 0 : i32
    %c0_i32_0 = arith.constant 0 : i32
    %c0_i32_1 = arith.constant 0 : i32
    return %c0_i32, %c0_i32_0 : i32, i32
  }
  func.func @transform_4(%arg0: i32) -> (i32, i32) {
    %c0_i32 = arith.constant 0 : i32
    %c0_i32_0 = arith.constant 0 : i32
    %c0_i32_1 = arith.constant 0 : i32
    return %c0_i32, %c0_i32_0 : i32, i32
  }
  func.func @transform_5(%arg0: i32) -> (i32, i32) {
    %c0_i32 = arith.constant 0 : i32
    %c0_i32_0 = arith.constant 0 : i32
    %c0_i32_1 = arith.constant 0 : i32
    return %c0_i32, %c0_i32_0 : i32, i32
  }
  func.func @transform_6(%arg0: i32) -> (i32, i32) {
    %c0_i32 = arith.constant 0 : i32
    %c0_i32_0 = arith.constant 0 : i32
    %c0_i32_1 = arith.constant 0 : i32
    return %c0_i32, %c0_i32_0 : i32, i32
  }
  func.func @transform_7(%arg0: i32) -> (i32, i32) {
    %c0_i32 = arith.constant 0 : i32
    %c0_i32_0 = arith.constant 0 : i32
    return %arg0, %c0_i32 : i32, i32
  }
}

</mosaic_0001>

<bundles_post_ra>
// kernel: swiprednn_forward.1
= control target key start
LH: loop header
LB: loop body
LE: loop exit
PB: predicated region body
PF: predicated region fallthrough
CT: control target
= control target key end

     0   :  { %s1164_s24 = smov 0   ;;  %s1295_s0 = inlined_call_operand.vmem [shape: f32[256,32], index: 0, kind: input, shape index: {}]   ;;  %s1296_s1 = inlined_call_operand.vmem [shape: bf16[32,128], index: 1, kind: input, shape index: {}]   ;;  %s1297_s2 = inlined_call_operand.vmem [shape: f32[1,128], index: 2, kind: input, shape index: {}]   ;;  %s1298_s3 = inlined_call_operand.vmem [shape: bf16[128,128], index: 3, kind: input, shape index: {}]   ;;  %s1299_s4 = inlined_call_operand.vmem [shape: f32[1,128], index: 4, kind: input, shape index: {}]   ;;  %s1300_s5 = inlined_call_operand.vmem [shape: bf16[128,128], index: 5, kind: input, shape index: {}]   ;;  %s1301_s6 = inlined_call_operand.vmem [shape: f32[1,128], index: 6, kind: input, shape index: {}]   ;;  %s1302_s7 = inlined_call_operand.vmem [shape: f32[256,128], index: 7, kind: output, shape index: {}]  }
   0x1 LB: > { %s924_s25 = sadd.s32 4294967295, %s1122_s24   ;;  %p928_p0 = scmp.ge.s32.totalorder %s1122_s24, 1  ;;  %s1122_s24 = sphi %s1164_s24, %s17_s24  }
   0x2   : > { %p238_p1 = scmp.lt.s32.totalorder %s1122_s24, 3 }
   0x4   : > { %p239_p2 = pnand %p928_p0, %p238_p1 }
   0x5   : > { %v1098_v0 = vld [vmem:[%s1296_s1] sm:$0xff] (!%p239_p2)   ;;  %s929_s28 = sshll.u32 (!%p239_p2), %s924_s25, 4  ;;  %v1099_v1 = vld [vmem:[%s1296_s1 + $0x8] sm:$0xff] (!%p239_p2)   ;;  %v1102_v4 = vld [vmem:[%s1298_s3 + $0x10] sm:$0xff] (!%p239_p2)   ;;  %vm330_vm0 = vcmask (!%p239_p2), 261120  }
   0x6   : > { %242 = sbr.rel (%p239_p2) target bundleno = 708 (0x2c4), region = 48  ;;  %p271_p3 = scmp.lt.s32.totalorder (!%p239_p2), %s929_s28, 31  ;;  %1006 = vmatprep.subr.bf16.mxu0 (!%p239_p2), %v1098_v0  ;;  %v1100_v2 = vld [vmem:[%s1298_s3] sm:$0xff] (!%p239_p2)   ;;  %v1101_v3 = vld [vmem:[%s1298_s3 + $0x8] sm:$0xff] (!%p239_p2)   ;;  %v1103_v14 = vld [vmem:[%s1298_s3 + $0x18] sm:$0xff] (!%p239_p2)  }
   0x7   : > { %1007 = vmatpush3.bf16.msra.mxu0 (!%p239_p2), %v1098_v0  ;;  %1026 = vmatprep.subr.bf16.mxu1 (!%p239_p2), %v1100_v2  ;;  %v1104_v18 = vld [vmem:[%s1298_s3 + $0x20] sm:$0xff] (!%p239_p2)   ;;  %v1105_v22 = vld [vmem:[%s1298_s3 + $0x28] sm:$0xff] (!%p239_p2)   ;;  %v1106_v32 = vld [vmem:[%s1298_s3 + $0x30] sm:$0xff] (!%p239_p2)  }
   0x8   : > { %1008 = vmatprep.subr.bf16.mxu0 (!%p239_p2), %v1099_v1  ;;  %1027 = vmatpush3.bf16.msra.mxu1 (!%p239_p2), %v1100_v2  ;;  %v1107_v33 = vld [vmem:[%s1298_s3 + $0x38] sm:$0xff] (!%p239_p2)   ;;  %v1108_v34 = vld [vmem:[%s1300_s5] sm:$0xff] (!%p239_p2)   ;;  %v1109_v35 = vld [vmem:[%s1300_s5 + $0x8] sm:$0xff] (!%p239_p2)  }
   0x9   : > { %1028 = vmatprep.subr.bf16.mxu1 (!%p239_p2), %v1101_v3  ;;  %v1110_v36 = vld [vmem:[%s1300_s5 + $0x10] sm:$0xff] (!%p239_p2)   ;;  %v1111_v37 = vld [vmem:[%s1300_s5 + $0x18] sm:$0xff] (!%p239_p2)   ;;  %v1112_v38 = vld [vmem:[%s1300_s5 + $0x20] sm:$0xff] (!%p239_p2)  }
   0xa   : > { %v1113_v39 = vld [vmem:[%s1300_s5 + $0x28] sm:$0xff] (!%p239_p2)   ;;  %v933_v40 = vld [vmem:[%s1297_s2] ss:$0 sm:$0xff] (!%p239_p2) }
   0xb   : > { %1009 = vmatpush3.bf16.msra.mxu0 (!%p239_p2), %v1099_v1 }
   0xc   : > { %1029 = vmatpush3.bf16.msra.mxu1 (!%p239_p2), %v1101_v3  ;;  %1058 = vmatprep.subr.bf16.mxu0 (!%p239_p2), %v1108_v34 }
   0xd   : > { %s1304_s28 = smov (!%p271_p3, %s929_s28), 31  ;;  %1030 = vmatprep.subr.bf16.mxu1 %v1102_v4 }
   0xe   : > { %s930_s12 = sshll.u32 %s1304_s28, 3 }
   0xf   : > { %s1192_s15 = scalar_lea.vmem %s1295_s0, %s930_s12  ;;  %s1274_s11 = scalar_lea.vmem %s1302_s7, %s930_s12 }
  0x10   : > { %v283_v5 = vld [vmem:[%s1192_s15] sm:$0xff]  ;;  %v284_v6 = vld [vmem:[%s1192_s15 + $0x8] sm:$0xff]  ;;  %v285_v7 = vld [vmem:[%s1192_s15 + $0x10] sm:$0xff]  ;;  %1031 = vmatpush3.bf16.msra.mxu1 %v1102_v4 }
  0x11   : > { %v299_v8 = vpack.c.bf16 %v284_v6, %v283_v5  ;;  %v286_v9 = vld [vmem:[%s1192_s15 + $0x18] sm:$0xff]  ;;  %v287_v10 = vld [vmem:[%s1192_s15 + $0x20] sm:$0xff]  ;;  %v288_v11 = vld [vmem:[%s1192_s15 + $0x28] sm:$0xff]  ;;  %1032 = vmatprep.subr.bf16.mxu1 %v1103_v14 }
  0x12   : > { %v300_v12 = vpack.c.bf16 %v286_v9, %v285_v7  ;;  %v301_v13 = vpack.c.bf16 %v288_v11, %v287_v10  ;;  %v289_v15 = vld [vmem:[%s1192_s15 + $0x30] sm:$0xff]  ;;  %v290_v16 = vld [vmem:[%s1192_s15 + $0x38] sm:$0xff]  ;;  %v291_v17 = vld [vmem:[%s1192_s15 + $0x40] sm:$0xff] }
  0x13   : > { %1010 = vmatprep.mubr.msk.bf16.mxu0 %vm330_vm0, %v299_v8  ;;  %v292_v19 = vld [vmem:[%s1192_s15 + $0x48] sm:$0xff]  ;;  %v302_v20 = vpack.c.bf16 %v290_v16, %v289_v15  ;;  %v293_v23 = vld [vmem:[%s1192_s15 + $0x50] sm:$0xff]  ;;  %v294_v24 = vld [vmem:[%s1192_s15 + $0x58] sm:$0xff] }
  0x14   : > { %1011 = vmatmul.mubr.msk.bf16.vlgmr.msra.gmra.mrb[0].mxu0 %vm330_vm0, %v300_v12  ;;  %v303_v21 = vpack.c.bf16 %v292_v19, %v291_v17  ;;  %1033 = vmatpush3.bf16.msra.mxu1 %v1103_v14  ;;  %v295_v25 = vld [vmem:[%s1192_s15 + $0x60] sm:$0xff]  ;;  %v296_v26 = vld [vmem:[%s1192_s15 + $0x68] sm:$0xff]  ;;  %v304_v27 = vpack.c.bf16 %v294_v24, %v293_v23  ;;  %v297_v29 = vld [vmem:[%s1192_s15 + $0x70] sm:$0xff] }
  0x15   : > { %1014 = vmatprep.mubr.msk.bf16.mxu0 %vm330_vm0, %v301_v13  ;;  %1034 = vmatprep.subr.bf16.mxu1 %v1104_v18  ;;  %v305_v28 = vpack.c.bf16 %v296_v26, %v295_v25  ;;  %v298_v30 = vld [vmem:[%s1192_s15 + $0x78] sm:$0xff] }
  0x16   : > { %v306_v31 = vpack.c.bf16 %v298_v30, %v297_v29  ;;  %1059 = vmatpush3.bf16.msra.mxu0 %v1108_v34  ;;  %v1115_v34 = vld [vmem:[%s1300_s5 + $0x38] sm:$0xff]  }
  0x17   : > { %1060 = vmatprep.subr.bf16.mxu0 %v1109_v35 }
  0x18   : > { %1035 = vmatpush3.bf16.msra.mxu1 %v1104_v18 }
  0x19   : > { %1036 = vmatprep.subr.bf16.mxu1 %v1105_v22 }
  0x1a   : > { %1061 = vmatpush3.bf16.msra.mxu0 %v1109_v35  ;;  %v944_v35 = vld [vmem:[%s1299_s4] ss:$0 sm:$0xff] }
  0x1b   : > { %1062 = vmatprep.subr.bf16.mxu0 %v1110_v36 }
  0x1c   : > { %1015 = vmatmul.mubr.msk.bf16.gmra.mrb[4].mxu0 %vm330_vm0, %v302_v20  ;;  %1037 = vmatpush3.bf16.msra.mxu1 %v1105_v22 }
  0x1d   : > { %1018 = vmatprep.mubr.msk.bf16.mxu0 %vm330_vm0, %v303_v21  ;;  %1038 = vmatprep.subr.bf16.mxu1 %v1106_v32 }
  0x1e   : > { %1063 = vmatpush3.bf16.msra.mxu0 %v1110_v36 }
  0x1f   : > { %1064 = vmatprep.subr.bf16.mxu0 %v1111_v37 }
  0x20   : > { %1039 = vmatpush3.bf16.msra.mxu1 %v1106_v32 }
  0x21   : > { %1040 = vmatprep.subr.bf16.mxu1 %v1107_v33 }
  0x22   : > { %1065 = vmatpush3.bf16.msra.mxu0 %v1111_v37 }
  0x23   : > { %1066 = vmatprep.subr.bf16.mxu0 %v1112_v38 }
  0x24   : > { %1019 = vmatmul.mubr.msk.bf16.gmra.mrb[8].mxu0 %vm330_vm0, %v304_v27  ;;  %1041 = vmatpush3.bf16.msra.mxu1 %v1107_v33  ;;  %v1114_v33 = vld [vmem:[%s1300_s5 + $0x30] sm:$0xff]  }
  0x25   : > { %1022 = vmatprep.mubr.msk.bf16.mxu0 %vm330_vm0, %v305_v28 }
  0x26   : > { %1067 = vmatpush3.bf16.msra.mxu0 %v1112_v38 }
  0x27   : > { %1068 = vmatprep.subr.bf16.mxu0 %v1113_v39 }
  0x2a   : > { %1069 = vmatpush3.bf16.msra.mxu0 %v1113_v39 }
  0x2b   : > { %1070 = vmatprep.subr.bf16.mxu0 %v1114_v33 }
  0x2c   : > { %1023 = vmatmul.mubr.msk.bf16.gmra.mrb[12].mxu0 %vm330_vm0, %v306_v31 }
  0x2e   : > { %1071 = vmatpush3.bf16.msra.mxu0 %v1114_v33 }
  0x2f   : > { %1072 = vmatprep.subr.bf16.mxu0 %v1115_v34 }
  0x32   : > { %1073 = vmatpush3.bf16.msra.mxu0 %v1115_v34 }
  0xe7   : > { %v1012_v41 = vpop.f32.mrb[0].mxu0 }
  0xe8   : > { %v398_v42 = vadd.f32 %v1012_v41, %v933_v40  ;;  %v389_v43 = vpop.f32.mrb[1].mxu0 }
  0xe9   : > { %v390_v44 = vadd.f32 %v933_v40, %v389_v43  ;;  %v1013_v45 = vpop.f32.mrb[2].mxu0 }
  0xea   : > { %v401_v46 = vadd.f32 %v1013_v45, %v933_v40  ;;  %v392_v47 = vpop.f32.mrb[3].mxu0  ;;  %v454_v49 = vmax.f32 %v398_v42, 0.0 }
  0xeb   : > { %v393_v48 = vadd.f32 %v933_v40, %v392_v47  ;;  %v452_v51 = vmax.f32 %v390_v44, 0.0 }
  0xec   : > { %v455_v50 = vmax.f32 %v401_v46, 0.0 }
  0xed   : > { %v453_v52 = vmax.f32 %v393_v48, 0.0 }
  0xee   : > { %v469_v53 = vpack.c.bf16 %v455_v50, %v454_v49 }
  0xef   : > { %v1016_v54 = vpop.f32.mrb[4].mxu0  ;;  %v468_v55 = vpack.c.bf16 %v453_v52, %v452_v51 }
  0xf0   : > { %v414_v56 = vadd.f32 %v1016_v54, %v933_v40  ;;  %v405_v57 = vpop.f32.mrb[5].mxu0 }
  0xf1   : > { %v406_v58 = vadd.f32 %v933_v40, %v405_v57  ;;  %v1017_v59 = vpop.f32.mrb[6].mxu0  ;;  %1042 = vmatprep.mubr.bf16.mxu1 %v468_v55 }
  0xf2   : > { %v417_v60 = vadd.f32 %v1017_v59, %v933_v40  ;;  %v408_v61 = vpop.f32.mrb[7].mxu0  ;;  %1043 = vmatmul.mubr.bf16.vlgmr.msra.gmra.mrb[0].mxu1 %v469_v53  ;;  %v458_v63 = vmax.f32 %v414_v56, 0.0 }
  0xf3   : > { %v409_v62 = vadd.f32 %v933_v40, %v408_v61  ;;  %v456_v1 = vmax.f32 %v406_v58, 0.0 }
  0xf4   : > { %v459_v0 = vmax.f32 %v417_v60, 0.0 }
  0xf5   : > { %v457_v2 = vmax.f32 %v409_v62, 0.0 }
  0xf6   : > { %v471_v3 = vpack.c.bf16 %v459_v0, %v458_v63 }
  0xf7   : > { %v470_v4 = vpack.c.bf16 %v457_v2, %v456_v1  ;;  %v1020_v5 = vpop.f32.mrb[8].mxu0 }
  0xf8   : > { %v430_v6 = vadd.f32 %v1020_v5, %v933_v40  ;;  %v421_v7 = vpop.f32.mrb[9].mxu0 }
  0xf9   : > { %v422_v8 = vadd.f32 %v933_v40, %v421_v7  ;;  %v1021_v9 = vpop.f32.mrb[10].mxu0  ;;  %1046 = vmatprep.mubr.bf16.mxu1 %v470_v4 }
  0xfa   : > { %v433_v10 = vadd.f32 %v1021_v9, %v933_v40  ;;  %v424_v11 = vpop.f32.mrb[11].mxu0  ;;  %1047 = vmatmul.mubr.bf16.gmra.mrb[4].mxu1 %v471_v3  ;;  %v462_v13 = vmax.f32 %v430_v6, 0.0 }
  0xfb   : > { %v425_v12 = vadd.f32 %v933_v40, %v424_v11  ;;  %v460_v15 = vmax.f32 %v422_v8, 0.0 }
  0xfc   : > { %v463_v14 = vmax.f32 %v433_v10, 0.0 }
  0xfd   : > { %v461_v16 = vmax.f32 %v425_v12, 0.0 }
  0xfe   : > { %v473_v17 = vpack.c.bf16 %v463_v14, %v462_v13 }
  0xff   : > { %v472_v18 = vpack.c.bf16 %v461_v16, %v460_v15  ;;  %v1024_v19 = vpop.f32.mrb[12].mxu0 }
 0x100   : > { %v446_v20 = vadd.f32 %v1024_v19, %v933_v40  ;;  %v437_v21 = vpop.f32.mrb[13].mxu0 }
 0x101   : > { %v438_v22 = vadd.f32 %v933_v40, %v437_v21  ;;  %v1025_v23 = vpop.f32.mrb[14].mxu0  ;;  %1050 = vmatprep.mubr.bf16.mxu1 %v472_v18 }
 0x102   : > { %v449_v24 = vadd.f32 %v1025_v23, %v933_v40  ;;  %v440_v25 = vpop.f32.mrb[15].mxu0  ;;  %1051 = vmatmul.mubr.bf16.gmra.mrb[8].mxu1 %v473_v17  ;;  %v466_v27 = vmax.f32 %v446_v20, 0.0 }
 0x103   : > { %v441_v26 = vadd.f32 %v933_v40, %v440_v25  ;;  %v464_v29 = vmax.f32 %v438_v22, 0.0 }
 0x104   : > { %v467_v28 = vmax.f32 %v449_v24, 0.0 }
 0x105   : > { %v465_v30 = vmax.f32 %v441_v26, 0.0 }
 0x106   : > { %v475_v31 = vpack.c.bf16 %v467_v28, %v466_v27  ;;  %v953_v28 = vld [vmem:[%s1301_s6] ss:$0 sm:$0xff] }
 0x107   : > { %v474_v32 = vpack.c.bf16 %v465_v30, %v464_v29 }
 0x109   : > { %1054 = vmatprep.mubr.bf16.mxu1 %v474_v32 }
 0x10a   : > { %1055 = vmatmul.mubr.bf16.gmra.mrb[12].mxu1 %v475_v31 }
 0x1c5   : > { %v1044_v36 = vpop.f32.mrb[0].mxu1 }
 0x1c6   : > { %v590_v37 = vadd.f32 %v1044_v36, %v944_v35  ;;  %v581_v38 = vpop.f32.mrb[1].mxu1 }
 0x1c7   : > { %v582_v39 = vadd.f32 %v944_v35, %v581_v38  ;;  %v1045_v40 = vpop.f32.mrb[2].mxu1 }
 0x1c8   : > { %v593_v41 = vadd.f32 %v1045_v40, %v944_v35  ;;  %v584_v42 = vpop.f32.mrb[3].mxu1  ;;  %v646_v44 = vmax.f32 %v590_v37, 0.0 }
 0x1c9   : > { %v585_v43 = vadd.f32 %v944_v35, %v584_v42  ;;  %v644_v46 = vmax.f32 %v582_v39, 0.0 }
 0x1ca   : > { %v647_v45 = vmax.f32 %v593_v41, 0.0 }
 0x1cb   : > { %v645_v47 = vmax.f32 %v585_v43, 0.0 }
 0x1cc   : > { %v661_v48 = vpack.c.bf16 %v647_v45, %v646_v44 }
 0x1cd   : > { %v660_v49 = vpack.c.bf16 %v645_v47, %v644_v46  ;;  %v1048_v50 = vpop.f32.mrb[4].mxu1 }
 0x1ce   : > { %v606_v51 = vadd.f32 %v1048_v50, %v944_v35  ;;  %v597_v52 = vpop.f32.mrb[5].mxu1 }
 0x1cf   : > { %v598_v53 = vadd.f32 %v944_v35, %v597_v52  ;;  %v1049_v54 = vpop.f32.mrb[6].mxu1  ;;  %1074 = vmatprep.mubr.bf16.mxu0 %v660_v49 }
 0x1d0   : > { %v609_v55 = vadd.f32 %v1049_v54, %v944_v35  ;;  %v600_v56 = vpop.f32.mrb[7].mxu1  ;;  %1075 = vmatmul.mubr.bf16.vlgmr.msra.gmra.mrb[16].mxu0 %v661_v48  ;;  %v650_v58 = vmax.f32 %v606_v51, 0.0 }
 0x1d1   : > { %v601_v57 = vadd.f32 %v944_v35, %v600_v56  ;;  %v648_v60 = vmax.f32 %v598_v53, 0.0 }
 0x1d2   : > { %v651_v59 = vmax.f32 %v609_v55, 0.0 }
 0x1d3   : > { %v649_v61 = vmax.f32 %v601_v57, 0.0 }
 0x1d4   : > { %v663_v62 = vpack.c.bf16 %v651_v59, %v650_v58 }
 0x1d5   : > { %v662_v63 = vpack.c.bf16 %v649_v61, %v648_v60  ;;  %v1052_v0 = vpop.f32.mrb[8].mxu1 }
 0x1d6   : > { %v622_v1 = vadd.f32 %v1052_v0, %v944_v35  ;;  %v613_v2 = vpop.f32.mrb[9].mxu1 }
 0x1d7   : > { %v614_v3 = vadd.f32 %v944_v35, %v613_v2  ;;  %v1053_v4 = vpop.f32.mrb[10].mxu1  ;;  %1078 = vmatprep.mubr.bf16.mxu0 %v662_v63 }
 0x1d8   : > { %v625_v5 = vadd.f32 %v1053_v4, %v944_v35  ;;  %v616_v6 = vpop.f32.mrb[11].mxu1  ;;  %1079 = vmatmul.mubr.bf16.gmra.mrb[20].mxu0 %v663_v62  ;;  %v654_v8 = vmax.f32 %v622_v1, 0.0 }
 0x1d9   : > { %v617_v7 = vadd.f32 %v944_v35, %v616_v6  ;;  %v652_v10 = vmax.f32 %v614_v3, 0.0 }
 0x1da   : > { %v655_v9 = vmax.f32 %v625_v5, 0.0 }
 0x1db   : > { %v653_v11 = vmax.f32 %v617_v7, 0.0 }
 0x1dc   : > { %v665_v12 = vpack.c.bf16 %v655_v9, %v654_v8 }
 0x1dd   : > { %v664_v13 = vpack.c.bf16 %v653_v11, %v652_v10  ;;  %v1056_v14 = vpop.f32.mrb[12].mxu1 }
 0x1de   : > { %v638_v15 = vadd.f32 %v1056_v14, %v944_v35  ;;  %v629_v16 = vpop.f32.mrb[13].mxu1 }
 0x1df   : > { %v630_v17 = vadd.f32 %v944_v35, %v629_v16  ;;  %v1057_v18 = vpop.f32.mrb[14].mxu1  ;;  %1082 = vmatprep.mubr.bf16.mxu0 %v664_v13 }
 0x1e0   : > { %v641_v19 = vadd.f32 %v1057_v18, %v944_v35  ;;  %v632_v20 = vpop.f32.mrb[15].mxu1  ;;  %1083 = vmatmul.mubr.bf16.gmra.mrb[24].mxu0 %v665_v12  ;;  %v658_v22 = vmax.f32 %v638_v15, 0.0 }
 0x1e1   : > { %v633_v21 = vadd.f32 %v944_v35, %v632_v20  ;;  %v656_v24 = vmax.f32 %v630_v17, 0.0 }
 0x1e2   : > { %v659_v23 = vmax.f32 %v641_v19, 0.0 }
 0x1e3   : > { %v657_v25 = vmax.f32 %v633_v21, 0.0 }
 0x1e4   : > { %v667_v26 = vpack.c.bf16 %v659_v23, %v658_v22 }
 0x1e5   : > { %v666_v27 = vpack.c.bf16 %v657_v25, %v656_v24 }
 0x1e7   : > { %1086 = vmatprep.mubr.bf16.mxu0 %v666_v27 }
 0x1e8   : > { %1087 = vmatmul.mubr.bf16.gmra.mrb[28].mxu0 %v667_v26 }
 0x2a3   : > { %v1076_v29 = vpop.f32.mrb[16].mxu0 }
 0x2a4   : > { %v782_v30 = vadd.f32 %v1076_v29, %v953_v28  ;;  %v773_v31 = vpop.f32.mrb[17].mxu0 }
 0x2a5   : > { %v774_v32 = vadd.f32 %v953_v28, %v773_v31  ;;  %v1077_v33 = vpop.f32.mrb[18].mxu0 }
 0x2a6   : > { %v838_v34 = vmax.f32 %v782_v30, 0.0  ;;  %v785_v35 = vadd.f32 %v1077_v33, %v953_v28  ;;  %v776_v36 = vpop.f32.mrb[19].mxu0 }
 0x2a7   : > { %v836_v37 = vmax.f32 %v774_v32, 0.0  ;;  %v777_v38 = vadd.f32 %v953_v28, %v776_v36 }
 0x2a8   : > { %854 = vst [vmem:[%s1274_s11 + $0x10] sm:$0xff] %v838_v34  ;;  %v839_v39 = vmax.f32 %v785_v35, 0.0 }
 0x2a9   : > { %852 = vst [vmem:[%s1274_s11] sm:$0xff] %v836_v37  ;;  %v837_v40 = vmax.f32 %v777_v38, 0.0 }
 0x2aa   : > { %855 = vst [vmem:[%s1274_s11 + $0x18] sm:$0xff] %v839_v39 }
 0x2ab   : > { %853 = vst [vmem:[%s1274_s11 + $0x8] sm:$0xff] %v837_v40  ;;  %v1080_v41 = vpop.f32.mrb[20].mxu0 }
 0x2ac   : > { %v798_v42 = vadd.f32 %v1080_v41, %v953_v28  ;;  %v789_v43 = vpop.f32.mrb[21].mxu0 }
 0x2ad   : > { %v790_v44 = vadd.f32 %v953_v28, %v789_v43  ;;  %v1081_v45 = vpop.f32.mrb[22].mxu0 }
 0x2ae   : > { %v842_v46 = vmax.f32 %v798_v42, 0.0  ;;  %v801_v47 = vadd.f32 %v1081_v45, %v953_v28  ;;  %v792_v48 = vpop.f32.mrb[23].mxu0 }
 0x2af   : > { %v840_v49 = vmax.f32 %v790_v44, 0.0  ;;  %v793_v50 = vadd.f32 %v953_v28, %v792_v48 }
 0x2b0   : > { %858 = vst [vmem:[%s1274_s11 + $0x30] sm:$0xff] %v842_v46  ;;  %v843_v51 = vmax.f32 %v801_v47, 0.0 }
 0x2b1   : > { %856 = vst [vmem:[%s1274_s11 + $0x20] sm:$0xff] %v840_v49  ;;  %v841_v52 = vmax.f32 %v793_v50, 0.0 }
 0x2b2   : > { %859 = vst [vmem:[%s1274_s11 + $0x38] sm:$0xff] %v843_v51 }
 0x2b3   : > { %857 = vst [vmem:[%s1274_s11 + $0x28] sm:$0xff] %v841_v52  ;;  %v1084_v53 = vpop.f32.mrb[24].mxu0 }
 0x2b4   : > { %v814_v54 = vadd.f32 %v1084_v53, %v953_v28  ;;  %v805_v55 = vpop.f32.mrb[25].mxu0 }
 0x2b5   : > { %v806_v56 = vadd.f32 %v953_v28, %v805_v55  ;;  %v1085_v57 = vpop.f32.mrb[26].mxu0 }
 0x2b6   : > { %v846_v58 = vmax.f32 %v814_v54, 0.0  ;;  %v817_v59 = vadd.f32 %v1085_v57, %v953_v28  ;;  %v808_v60 = vpop.f32.mrb[27].mxu0 }
 0x2b7   : > { %v844_v61 = vmax.f32 %v806_v56, 0.0  ;;  %v809_v62 = vadd.f32 %v953_v28, %v808_v60 }
 0x2b8   : > { %862 = vst [vmem:[%s1274_s11 + $0x50] sm:$0xff] %v846_v58  ;;  %v847_v63 = vmax.f32 %v817_v59, 0.0 }
 0x2b9   : > { %860 = vst [vmem:[%s1274_s11 + $0x40] sm:$0xff] %v844_v61  ;;  %v845_v0 = vmax.f32 %v809_v62, 0.0 }
 0x2ba   : > { %863 = vst [vmem:[%s1274_s11 + $0x58] sm:$0xff] %v847_v63 }
 0x2bb   : > { %861 = vst [vmem:[%s1274_s11 + $0x48] sm:$0xff] %v845_v0  ;;  %v1088_v1 = vpop.f32.mrb[28].mxu0 }
 0x2bc   : > { %v830_v2 = vadd.f32 %v1088_v1, %v953_v28  ;;  %v821_v3 = vpop.f32.mrb[29].mxu0 }
 0x2bd   : > { %v822_v4 = vadd.f32 %v953_v28, %v821_v3  ;;  %v1089_v5 = vpop.f32.mrb[30].mxu0 }
 0x2be   : > { %v850_v6 = vmax.f32 %v830_v2, 0.0  ;;  %v833_v7 = vadd.f32 %v1089_v5, %v953_v28  ;;  %v824_v8 = vpop.f32.mrb[31].mxu0 }
 0x2bf   : > { %v848_v9 = vmax.f32 %v822_v4, 0.0  ;;  %v825_v10 = vadd.f32 %v953_v28, %v824_v8 }
 0x2c0   : > { %866 = vst [vmem:[%s1274_s11 + $0x70] sm:$0xff] %v850_v6  ;;  %v851_v11 = vmax.f32 %v833_v7, 0.0 }
 0x2c1   : > { %864 = vst [vmem:[%s1274_s11 + $0x60] sm:$0xff] %v848_v9  ;;  %v849_v12 = vmax.f32 %v825_v10, 0.0 }
 0x2c2   : > { %867 = vst [vmem:[%s1274_s11 + $0x78] sm:$0xff] %v851_v11 }
 0x2c3   : > { %865 = vst [vmem:[%s1274_s11 + $0x68] sm:$0xff] %v849_v12 }
 0x2c4 PF: > { %s17_s24 = sadd.s32 1, %s1122_s24  }
 0x2c5   : > { %p14_p4 = scmp.ge.s32.totalorder %s17_s24, 4  }
 0x2c7   :  { %16 = sbr.rel (!%p14_p4) target bundleno = 1 (0x1), region = 78 }

// kernel: swiprednn_forward.1
= control target key start
LH: loop header
LB: loop body
LE: loop exit
PB: predicated region body
PF: predicated region fallthrough
CT: control target
= control target key end

     0   :  { %s1164_s24 = smov 0   ;;  %s1295_s0 = inlined_call_operand.vmem [shape: f32[256,32], index: 0, kind: input, shape index: {}]   ;;  %s1296_s1 = inlined_call_operand.vmem [shape: bf16[32,128], index: 1, kind: input, shape index: {}]   ;;  %s1297_s2 = inlined_call_operand.vmem [shape: f32[1,128], index: 2, kind: input, shape index: {}]   ;;  %s1298_s3 = inlined_call_operand.vmem [shape: bf16[128,128], index: 3, kind: input, shape index: {}]   ;;  %s1299_s4 = inlined_call_operand.vmem [shape: f32[1,128], index: 4, kind: input, shape index: {}]   ;;  %s1300_s5 = inlined_call_operand.vmem [shape: bf16[128,128], index: 5, kind: input, shape index: {}]   ;;  %s1301_s6 = inlined_call_operand.vmem [shape: f32[1,128], index: 6, kind: input, shape index: {}]   ;;  %s1302_s7 = inlined_call_operand.vmem [shape: f32[256,128], index: 7, kind: output, shape index: {}]  }
   0x1 LB: > { %s924_s25 = sadd.s32 4294967295, %s1122_s24   ;;  %p928_p0 = scmp.ge.s32.totalorder %s1122_s24, 1  ;;  %s1122_s24 = sphi %s1164_s24, %s17_s24  }
   0x2   : > { %p238_p1 = scmp.lt.s32.totalorder %s1122_s24, 3 }
   0x4   : > { %p239_p2 = pnand %p928_p0, %p238_p1 }
   0x5   : > { %v1098_v0 = vld [vmem:[%s1296_s1] sm:$0xff] (!%p239_p2)   ;;  %s929_s28 = sshll.u32 (!%p239_p2), %s924_s25, 4  ;;  %v1099_v1 = vld [vmem:[%s1296_s1 + $0x8] sm:$0xff] (!%p239_p2)   ;;  %v1102_v4 = vld [vmem:[%s1298_s3 + $0x10] sm:$0xff] (!%p239_p2)   ;;  %vm330_vm0 = vcmask (!%p239_p2), 261120  }
   0x6   : > { %242 = sbr.rel (%p239_p2) target bundleno = 708 (0x2c4), region = 48  ;;  %p271_p3 = scmp.lt.s32.totalorder (!%p239_p2), %s929_s28, 31  ;;  %1006 = vmatprep.subr.bf16.mxu0 (!%p239_p2), %v1098_v0  ;;  %v1100_v2 = vld [vmem:[%s1298_s3] sm:$0xff] (!%p239_p2)   ;;  %v1101_v3 = vld [vmem:[%s1298_s3 + $0x8] sm:$0xff] (!%p239_p2)   ;;  %v1103_v14 = vld [vmem:[%s1298_s3 + $0x18] sm:$0xff] (!%p239_p2)  }
   0x7   : > { %1007 = vmatpush3.bf16.msra.mxu0 (!%p239_p2), %v1098_v0  ;;  %1026 = vmatprep.subr.bf16.mxu1 (!%p239_p2), %v1100_v2  ;;  %v1104_v18 = vld [vmem:[%s1298_s3 + $0x20] sm:$0xff] (!%p239_p2)   ;;  %v1105_v22 = vld [vmem:[%s1298_s3 + $0x28] sm:$0xff] (!%p239_p2)   ;;  %v1106_v32 = vld [vmem:[%s1298_s3 + $0x30] sm:$0xff] (!%p239_p2)  }
   0x8   : > { %1008 = vmatprep.subr.bf16.mxu0 (!%p239_p2), %v1099_v1  ;;  %1027 = vmatpush3.bf16.msra.mxu1 (!%p239_p2), %v1100_v2  ;;  %v1107_v33 = vld [vmem:[%s1298_s3 + $0x38] sm:$0xff] (!%p239_p2)   ;;  %v1108_v34 = vld [vmem:[%s1300_s5] sm:$0xff] (!%p239_p2)   ;;  %v1109_v35 = vld [vmem:[%s1300_s5 + $0x8] sm:$0xff] (!%p239_p2)  }
   0x9   : > { %1028 = vmatprep.subr.bf16.mxu1 (!%p239_p2), %v1101_v3  ;;  %v1110_v36 = vld [vmem:[%s1300_s5 + $0x10] sm:$0xff] (!%p239_p2)   ;;  %v1111_v37 = vld [vmem:[%s1300_s5 + $0x18] sm:$0xff] (!%p239_p2)   ;;  %v1112_v38 = vld [vmem:[%s1300_s5 + $0x20] sm:$0xff] (!%p239_p2)  }
   0xa   : > { %v1113_v39 = vld [vmem:[%s1300_s5 + $0x28] sm:$0xff] (!%p239_p2)   ;;  %v933_v40 = vld [vmem:[%s1297_s2] ss:$0 sm:$0xff] (!%p239_p2) }
   0xb   : > { %1009 = vmatpush3.bf16.msra.mxu0 (!%p239_p2), %v1099_v1 }
   0xc   : > { %1029 = vmatpush3.bf16.msra.mxu1 (!%p239_p2), %v1101_v3  ;;  %1058 = vmatprep.subr.bf16.mxu0 (!%p239_p2), %v1108_v34 }
   0xd   : > { %s1304_s28 = smov (!%p271_p3, %s929_s28), 31  ;;  %1030 = vmatprep.subr.bf16.mxu1 %v1102_v4 }
   0xe   : > { %s930_s12 = sshll.u32 %s1304_s28, 3 }
   0xf   : > { %s1192_s15 = scalar_lea.vmem %s1295_s0, %s930_s12  ;;  %s1274_s11 = scalar_lea.vmem %s1302_s7, %s930_s12 }
  0x10   : > { %v283_v5 = vld [vmem:[%s1192_s15] sm:$0xff]  ;;  %v284_v6 = vld [vmem:[%s1192_s15 + $0x8] sm:$0xff]  ;;  %v285_v7 = vld [vmem:[%s1192_s15 + $0x10] sm:$0xff]  ;;  %1031 = vmatpush3.bf16.msra.mxu1 %v1102_v4 }
  0x11   : > { %v299_v8 = vpack.c.bf16 %v284_v6, %v283_v5  ;;  %v286_v9 = vld [vmem:[%s1192_s15 + $0x18] sm:$0xff]  ;;  %v287_v10 = vld [vmem:[%s1192_s15 + $0x20] sm:$0xff]  ;;  %v288_v11 = vld [vmem:[%s1192_s15 + $0x28] sm:$0xff]  ;;  %1032 = vmatprep.subr.bf16.mxu1 %v1103_v14 }
  0x12   : > { %v300_v12 = vpack.c.bf16 %v286_v9, %v285_v7  ;;  %v301_v13 = vpack.c.bf16 %v288_v11, %v287_v10  ;;  %v289_v15 = vld [vmem:[%s1192_s15 + $0x30] sm:$0xff]  ;;  %v290_v16 = vld [vmem:[%s1192_s15 + $0x38] sm:$0xff]  ;;  %v291_v17 = vld [vmem:[%s1192_s15 + $0x40] sm:$0xff] }
  0x13   : > { %1010 = vmatprep.mubr.msk.bf16.mxu0 %vm330_vm0, %v299_v8  ;;  %v292_v19 = vld [vmem:[%s1192_s15 + $0x48] sm:$0xff]  ;;  %v302_v20 = vpack.c.bf16 %v290_v16, %v289_v15  ;;  %v293_v23 = vld [vmem:[%s1192_s15 + $0x50] sm:$0xff]  ;;  %v294_v24 = vld [vmem:[%s1192_s15 + $0x58] sm:$0xff] }
  0x14   : > { %1011 = vmatmul.mubr.msk.bf16.vlgmr.msra.gmra.mrb[0].mxu0 %vm330_vm0, %v300_v12  ;;  %v303_v21 = vpack.c.bf16 %v292_v19, %v291_v17  ;;  %1033 = vmatpush3.bf16.msra.mxu1 %v1103_v14  ;;  %v295_v25 = vld [vmem:[%s1192_s15 + $0x60] sm:$0xff]  ;;  %v296_v26 = vld [vmem:[%s1192_s15 + $0x68] sm:$0xff]  ;;  %v304_v27 = vpack.c.bf16 %v294_v24, %v293_v23  ;;  %v297_v29 = vld [vmem:[%s1192_s15 + $0x70] sm:$0xff] }
  0x15   : > { %1014 = vmatprep.mubr.msk.bf16.mxu0 %vm330_vm0, %v301_v13  ;;  %1034 = vmatprep.subr.bf16.mxu1 %v1104_v18  ;;  %v305_v28 = vpack.c.bf16 %v296_v26, %v295_v25  ;;  %v298_v30 = vld [vmem:[%s1192_s15 + $0x78] sm:$0xff] }
  0x16   : > { %v306_v31 = vpack.c.bf16 %v298_v30, %v297_v29  ;;  %1059 = vmatpush3.bf16.msra.mxu0 %v1108_v34  ;;  %v1115_v34 = vld [vmem:[%s1300_s5 + $0x38] sm:$0xff]  }
  0x17   : > { %1060 = vmatprep.subr.bf16.mxu0 %v1109_v35 }
  0x18   : > { %1035 = vmatpush3.bf16.msra.mxu1 %v1104_v18 }
  0x19   : > { %1036 = vmatprep.subr.bf16.mxu1 %v1105_v22 }
  0x1a   : > { %1061 = vmatpush3.bf16.msra.mxu0 %v1109_v35  ;;  %v944_v35 = vld [vmem:[%s1299_s4] ss:$0 sm:$0xff] }
  0x1b   : > { %1062 = vmatprep.subr.bf16.mxu0 %v1110_v36 }
  0x1c   : > { %1015 = vmatmul.mubr.msk.bf16.gmra.mrb[4].mxu0 %vm330_vm0, %v302_v20  ;;  %1037 = vmatpush3.bf16.msra.mxu1 %v1105_v22 }
  0x1d   : > { %1018 = vmatprep.mubr.msk.bf16.mxu0 %vm330_vm0, %v303_v21  ;;  %1038 = vmatprep.subr.bf16.mxu1 %v1106_v32 }
  0x1e   : > { %1063 = vmatpush3.bf16.msra.mxu0 %v1110_v36 }
  0x1f   : > { %1064 = vmatprep.subr.bf16.mxu0 %v1111_v37 }
  0x20   : > { %1039 = vmatpush3.bf16.msra.mxu1 %v1106_v32 }
  0x21   : > { %1040 = vmatprep.subr.bf16.mxu1 %v1107_v33 }
  0x22   : > { %1065 = vmatpush3.bf16.msra.mxu0 %v1111_v37 }
  0x23   : > { %1066 = vmatprep.subr.bf16.mxu0 %v1112_v38 }
  0x24   : > { %1019 = vmatmul.mubr.msk.bf16.gmra.mrb[8].mxu0 %vm330_vm0, %v304_v27  ;;  %1041 = vmatpush3.bf16.msra.mxu1 %v1107_v33  ;;  %v1114_v33 = vld [vmem:[%s1300_s5 + $0x30] sm:$0xff]  }
  0x25   : > { %1022 = vmatprep.mubr.msk.bf16.mxu0 %vm330_vm0, %v305_v28 }
  0x26   : > { %1067 = vmatpush3.bf16.msra.mxu0 %v1112_v38 }
  0x27   : > { %1068 = vmatprep.subr.bf16.mxu0 %v1113_v39 }
  0x2a   : > { %1069 = vmatpush3.bf16.msra.mxu0 %v1113_v39 }
  0x2b   : > { %1070 = vmatprep.subr.bf16.mxu0 %v1114_v33 }
  0x2c   : > { %1023 = vmatmul.mubr.msk.bf16.gmra.mrb[12].mxu0 %vm330_vm0, %v306_v31 }
  0x2e   : > { %1071 = vmatpush3.bf16.msra.mxu0 %v1114_v33 }
  0x2f   : > { %1072 = vmatprep.subr.bf16.mxu0 %v1115_v34 }
  0x32   : > { %1073 = vmatpush3.bf16.msra.mxu0 %v1115_v34 }
  0xe7   : > { %v1012_v41 = vpop.f32.mrb[0].mxu0 }
  0xe8   : > { %v398_v42 = vadd.f32 %v1012_v41, %v933_v40  ;;  %v389_v43 = vpop.f32.mrb[1].mxu0 }
  0xe9   : > { %v390_v44 = vadd.f32 %v933_v40, %v389_v43  ;;  %v1013_v45 = vpop.f32.mrb[2].mxu0 }
  0xea   : > { %v401_v46 = vadd.f32 %v1013_v45, %v933_v40  ;;  %v392_v47 = vpop.f32.mrb[3].mxu0  ;;  %v454_v49 = vmax.f32 %v398_v42, 0.0 }
  0xeb   : > { %v393_v48 = vadd.f32 %v933_v40, %v392_v47  ;;  %v452_v51 = vmax.f32 %v390_v44, 0.0 }
  0xec   : > { %v455_v50 = vmax.f32 %v401_v46, 0.0 }
  0xed   : > { %v453_v52 = vmax.f32 %v393_v48, 0.0 }
  0xee   : > { %v469_v53 = vpack.c.bf16 %v455_v50, %v454_v49 }
  0xef   : > { %v1016_v54 = vpop.f32.mrb[4].mxu0  ;;  %v468_v55 = vpack.c.bf16 %v453_v52, %v452_v51 }
  0xf0   : > { %v414_v56 = vadd.f32 %v1016_v54, %v933_v40  ;;  %v405_v57 = vpop.f32.mrb[5].mxu0 }
  0xf1   : > { %v406_v58 = vadd.f32 %v933_v40, %v405_v57  ;;  %v1017_v59 = vpop.f32.mrb[6].mxu0  ;;  %1042 = vmatprep.mubr.bf16.mxu1 %v468_v55 }
  0xf2   : > { %v417_v60 = vadd.f32 %v1017_v59, %v933_v40  ;;  %v408_v61 = vpop.f32.mrb[7].mxu0  ;;  %1043 = vmatmul.mubr.bf16.vlgmr.msra.gmra.mrb[0].mxu1 %v469_v53  ;;  %v458_v63 = vmax.f32 %v414_v56, 0.0 }
  0xf3   : > { %v409_v62 = vadd.f32 %v933_v40, %v408_v61  ;;  %v456_v1 = vmax.f32 %v406_v58, 0.0 }
  0xf4   : > { %v459_v0 = vmax.f32 %v417_v60, 0.0 }
  0xf5   : > { %v457_v2 = vmax.f32 %v409_v62, 0.0 }
  0xf6   : > { %v471_v3 = vpack.c.bf16 %v459_v0, %v458_v63 }
  0xf7   : > { %v470_v4 = vpack.c.bf16 %v457_v2, %v456_v1  ;;  %v1020_v5 = vpop.f32.mrb[8].mxu0 }
  0xf8   : > { %v430_v6 = vadd.f32 %v1020_v5, %v933_v40  ;;  %v421_v7 = vpop.f32.mrb[9].mxu0 }
  0xf9   : > { %v422_v8 = vadd.f32 %v933_v40, %v421_v7  ;;  %v1021_v9 = vpop.f32.mrb[10].mxu0  ;;  %1046 = vmatprep.mubr.bf16.mxu1 %v470_v4 }
  0xfa   : > { %v433_v10 = vadd.f32 %v1021_v9, %v933_v40  ;;  %v424_v11 = vpop.f32.mrb[11].mxu0  ;;  %1047 = vmatmul.mubr.bf16.gmra.mrb[4].mxu1 %v471_v3  ;;  %v462_v13 = vmax.f32 %v430_v6, 0.0 }
  0xfb   : > { %v425_v12 = vadd.f32 %v933_v40, %v424_v11  ;;  %v460_v15 = vmax.f32 %v422_v8, 0.0 }
  0xfc   : > { %v463_v14 = vmax.f32 %v433_v10, 0.0 }
  0xfd   : > { %v461_v16 = vmax.f32 %v425_v12, 0.0 }
  0xfe   : > { %v473_v17 = vpack.c.bf16 %v463_v14, %v462_v13 }
  0xff   : > { %v472_v18 = vpack.c.bf16 %v461_v16, %v460_v15  ;;  %v1024_v19 = vpop.f32.mrb[12].mxu0 }
 0x100   : > { %v446_v20 = vadd.f32 %v1024_v19, %v933_v40  ;;  %v437_v21 = vpop.f32.mrb[13].mxu0 }
 0x101   : > { %v438_v22 = vadd.f32 %v933_v40, %v437_v21  ;;  %v1025_v23 = vpop.f32.mrb[14].mxu0  ;;  %1050 = vmatprep.mubr.bf16.mxu1 %v472_v18 }
 0x102   : > { %v449_v24 = vadd.f32 %v1025_v23, %v933_v40  ;;  %v440_v25 = vpop.f32.mrb[15].mxu0  ;;  %1051 = vmatmul.mubr.bf16.gmra.mrb[8].mxu1 %v473_v17  ;;  %v466_v27 = vmax.f32 %v446_v20, 0.0 }
 0x103   : > { %v441_v26 = vadd.f32 %v933_v40, %v440_v25  ;;  %v464_v29 = vmax.f32 %v438_v22, 0.0 }
 0x104   : > { %v467_v28 = vmax.f32 %v449_v24, 0.0 }
 0x105   : > { %v465_v30 = vmax.f32 %v441_v26, 0.0 }
 0x106   : > { %v475_v31 = vpack.c.bf16 %v467_v28, %v466_v27  ;;  %v953_v28 = vld [vmem:[%s1301_s6] ss:$0 sm:$0xff] }
 0x107   : > { %v474_v32 = vpack.c.bf16 %v465_v30, %v464_v29 }
 0x109   : > { %1054 = vmatprep.mubr.bf16.mxu1 %v474_v32 }
 0x10a   : > { %1055 = vmatmul.mubr.bf16.gmra.mrb[12].mxu1 %v475_v31 }
 0x1c5   : > { %v1044_v36 = vpop.f32.mrb[0].mxu1 }
 0x1c6   : > { %v590_v37 = vadd.f32 %v1044_v36, %v944_v35  ;;  %v581_v38 = vpop.f32.mrb[1].mxu1 }
 0x1c7   : > { %v582_v39 = vadd.f32 %v944_v35, %v581_v38  ;;  %v1045_v40 = vpop.f32.mrb[2].mxu1 }
 0x1c8   : > { %v593_v41 = vadd.f32 %v1045_v40, %v944_v35  ;;  %v584_v42 = vpop.f32.mrb[3].mxu1  ;;  %v646_v44 = vmax.f32 %v590_v37, 0.0 }
 0x1c9   : > { %v585_v43 = vadd.f32 %v944_v35, %v584_v42  ;;  %v644_v46 = vmax.f32 %v582_v39, 0.0 }
 0x1ca   : > { %v647_v45 = vmax.f32 %v593_v41, 0.0 }
 0x1cb   : > { %v645_v47 = vmax.f32 %v585_v43, 0.0 }
 0x1cc   : > { %v661_v48 = vpack.c.bf16 %v647_v45, %v646_v44 }
 0x1cd   : > { %v660_v49 = vpack.c.bf16 %v645_v47, %v644_v46  ;;  %v1048_v50 = vpop.f32.mrb[4].mxu1 }
 0x1ce   : > { %v606_v51 = vadd.f32 %v1048_v50, %v944_v35  ;;  %v597_v52 = vpop.f32.mrb[5].mxu1 }
 0x1cf   : > { %v598_v53 = vadd.f32 %v944_v35, %v597_v52  ;;  %v1049_v54 = vpop.f32.mrb[6].mxu1  ;;  %1074 = vmatprep.mubr.bf16.mxu0 %v660_v49 }
 0x1d0   : > { %v609_v55 = vadd.f32 %v1049_v54, %v944_v35  ;;  %v600_v56 = vpop.f32.mrb[7].mxu1  ;;  %1075 = vmatmul.mubr.bf16.vlgmr.msra.gmra.mrb[16].mxu0 %v661_v48  ;;  %v650_v58 = vmax.f32 %v606_v51, 0.0 }
 0x1d1   : > { %v601_v57 = vadd.f32 %v944_v35, %v600_v56  ;;  %v648_v60 = vmax.f32 %v598_v53, 0.0 }
 0x1d2   : > { %v651_v59 = vmax.f32 %v609_v55, 0.0 }
 0x1d3   : > { %v649_v61 = vmax.f32 %v601_v57, 0.0 }
 0x1d4   : > { %v663_v62 = vpack.c.bf16 %v651_v59, %v650_v58 }
 0x1d5   : > { %v662_v63 = vpack.c.bf16 %v649_v61, %v648_v60  ;;  %v1052_v0 = vpop.f32.mrb[8].mxu1 }
 0x1d6   : > { %v622_v1 = vadd.f32 %v1052_v0, %v944_v35  ;;  %v613_v2 = vpop.f32.mrb[9].mxu1 }
 0x1d7   : > { %v614_v3 = vadd.f32 %v944_v35, %v613_v2  ;;  %v1053_v4 = vpop.f32.mrb[10].mxu1  ;;  %1078 = vmatprep.mubr.bf16.mxu0 %v662_v63 }
 0x1d8   : > { %v625_v5 = vadd.f32 %v1053_v4, %v944_v35  ;;  %v616_v6 = vpop.f32.mrb[11].mxu1  ;;  %1079 = vmatmul.mubr.bf16.gmra.mrb[20].mxu0 %v663_v62  ;;  %v654_v8 = vmax.f32 %v622_v1, 0.0 }
 0x1d9   : > { %v617_v7 = vadd.f32 %v944_v35, %v616_v6  ;;  %v652_v10 = vmax.f32 %v614_v3, 0.0 }
 0x1da   : > { %v655_v9 = vmax.f32 %v625_v5, 0.0 }
 0x1db   : > { %v653_v11 = vmax.f32 %v617_v7, 0.0 }
 0x1dc   : > { %v665_v12 = vpack.c.bf16 %v655_v9, %v654_v8 }
 0x1dd   : > { %v664_v13 = vpack.c.bf16 %v653_v11, %v652_v10  ;;  %v1056_v14 = vpop.f32.mrb[12].mxu1 }
 0x1de   : > { %v638_v15 = vadd.f32 %v1056_v14, %v944_v35  ;;  %v629_v16 = vpop.f32.mrb[13].mxu1 }
 0x1df   : > { %v630_v17 = vadd.f32 %v944_v35, %v629_v16  ;;  %v1057_v18 = vpop.f32.mrb[14].mxu1  ;;  %1082 = vmatprep.mubr.bf16.mxu0 %v664_v13 }
 0x1e0   : > { %v641_v19 = vadd.f32 %v1057_v18, %v944_v35  ;;  %v632_v20 = vpop.f32.mrb[15].mxu1  ;;  %1083 = vmatmul.mubr.bf16.gmra.mrb[24].mxu0 %v665_v12  ;;  %v658_v22 = vmax.f32 %v638_v15, 0.0 }
 0x1e1   : > { %v633_v21 = vadd.f32 %v944_v35, %v632_v20  ;;  %v656_v24 = vmax.f32 %v630_v17, 0.0 }
 0x1e2   : > { %v659_v23 = vmax.f32 %v641_v19, 0.0 }
 0x1e3   : > { %v657_v25 = vmax.f32 %v633_v21, 0.0 }
 0x1e4   : > { %v667_v26 = vpack.c.bf16 %v659_v23, %v658_v22 }
 0x1e5   : > { %v666_v27 = vpack.c.bf16 %v657_v25, %v656_v24 }
 0x1e7   : > { %1086 = vmatprep.mubr.bf16.mxu0 %v666_v27 }
 0x1e8   : > { %1087 = vmatmul.mubr.bf16.gmra.mrb[28].mxu0 %v667_v26 }
 0x2a3   : > { %v1076_v29 = vpop.f32.mrb[16].mxu0 }
 0x2a4   : > { %v782_v30 = vadd.f32 %v1076_v29, %v953_v28  ;;  %v773_v31 = vpop.f32.mrb[17].mxu0 }
 0x2a5   : > { %v774_v32 = vadd.f32 %v953_v28, %v773_v31  ;;  %v1077_v33 = vpop.f32.mrb[18].mxu0 }
 0x2a6   : > { %v838_v34 = vmax.f32 %v782_v30, 0.0  ;;  %v785_v35 = vadd.f32 %v1077_v33, %v953_v28  ;;  %v776_v36 = vpop.f32.mrb[19].mxu0 }
 0x2a7   : > { %v836_v37 = vmax.f32 %v774_v32, 0.0  ;;  %v777_v38 = vadd.f32 %v953_v28, %v776_v36 }
 0x2a8   : > { %854 = vst [vmem:[%s1274_s11 + $0x10] sm:$0xff] %v838_v34  ;;  %v839_v39 = vmax.f32 %v785_v35, 0.0 }
 0x2a9   : > { %852 = vst [vmem:[%s1274_s11] sm:$0xff] %v836_v37  ;;  %v837_v40 = vmax.f32 %v777_v38, 0.0 }
 0x2aa   : > { %855 = vst [vmem:[%s1274_s11 + $0x18] sm:$0xff] %v839_v39 }
 0x2ab   : > { %853 = vst [vmem:[%s1274_s11 + $0x8] sm:$0xff] %v837_v40  ;;  %v1080_v41 = vpop.f32.mrb[20].mxu0 }
 0x2ac   : > { %v798_v42 = vadd.f32 %v1080_v41, %v953_v28  ;;  %v789_v43 = vpop.f32.mrb[21].mxu0 }
 0x2ad   : > { %v790_v44 = vadd.f32 %v953_v28, %v789_v43  ;;  %v1081_v45 = vpop.f32.mrb[22].mxu0 }
 0x2ae   : > { %v842_v46 = vmax.f32 %v798_v42, 0.0  ;;  %v801_v47 = vadd.f32 %v1081_v45, %v953_v28  ;;  %v792_v48 = vpop.f32.mrb[23].mxu0 }
 0x2af   : > { %v840_v49 = vmax.f32 %v790_v44, 0.0  ;;  %v793_v50 = vadd.f32 %v953_v28, %v792_v48 }
 0x2b0   : > { %858 = vst [vmem:[%s1274_s11 + $0x30] sm:$0xff] %v842_v46  ;;  %v843_v51 = vmax.f32 %v801_v47, 0.0 }
 0x2b1   : > { %856 = vst [vmem:[%s1274_s11 + $0x20] sm:$0xff] %v840_v49  ;;  %v841_v52 = vmax.f32 %v793_v50, 0.0 }
 0x2b2   : > { %859 = vst [vmem:[%s1274_s11 + $0x38] sm:$0xff] %v843_v51 }
 0x2b3   : > { %857 = vst [vmem:[%s1274_s11 + $0x28] sm:$0xff] %v841_v52  ;;  %v1084_v53 = vpop.f32.mrb[24].mxu0 }
 0x2b4   : > { %v814_v54 = vadd.f32 %v1084_v53, %v953_v28  ;;  %v805_v55 = vpop.f32.mrb[25].mxu0 }
 0x2b5   : > { %v806_v56 = vadd.f32 %v953_v28, %v805_v55  ;;  %v1085_v57 = vpop.f32.mrb[26].mxu0 }
 0x2b6   : > { %v846_v58 = vmax.f32 %v814_v54, 0.0  ;;  %v817_v59 = vadd.f32 %v1085_v57, %v953_v28  ;;  %v808_v60 = vpop.f32.mrb[27].mxu0 }
 0x2b7   : > { %v844_v61 = vmax.f32 %v806_v56, 0.0  ;;  %v809_v62 = vadd.f32 %v953_v28, %v808_v60 }
 0x2b8   : > { %862 = vst [vmem:[%s1274_s11 + $0x50] sm:$0xff] %v846_v58  ;;  %v847_v63 = vmax.f32 %v817_v59, 0.0 }
 0x2b9   : > { %860 = vst [vmem:[%s1274_s11 + $0x40] sm:$0xff] %v844_v61  ;;  %v845_v0 = vmax.f32 %v809_v62, 0.0 }
 0x2ba   : > { %863 = vst [vmem:[%s1274_s11 + $0x58] sm:$0xff] %v847_v63 }
 0x2bb   : > { %861 = vst [vmem:[%s1274_s11 + $0x48] sm:$0xff] %v845_v0  ;;  %v1088_v1 = vpop.f32.mrb[28].mxu0 }
 0x2bc   : > { %v830_v2 = vadd.f32 %v1088_v1, %v953_v28  ;;  %v821_v3 = vpop.f32.mrb[29].mxu0 }
 0x2bd   : > { %v822_v4 = vadd.f32 %v953_v28, %v821_v3  ;;  %v1089_v5 = vpop.f32.mrb[30].mxu0 }
 0x2be   : > { %v850_v6 = vmax.f32 %v830_v2, 0.0  ;;  %v833_v7 = vadd.f32 %v1089_v5, %v953_v28  ;;  %v824_v8 = vpop.f32.mrb[31].mxu0 }
 0x2bf   : > { %v848_v9 = vmax.f32 %v822_v4, 0.0  ;;  %v825_v10 = vadd.f32 %v953_v28, %v824_v8 }
 0x2c0   : > { %866 = vst [vmem:[%s1274_s11 + $0x70] sm:$0xff] %v850_v6  ;;  %v851_v11 = vmax.f32 %v833_v7, 0.0 }
 0x2c1   : > { %864 = vst [vmem:[%s1274_s11 + $0x60] sm:$0xff] %v848_v9  ;;  %v849_v12 = vmax.f32 %v825_v10, 0.0 }
 0x2c2   : > { %867 = vst [vmem:[%s1274_s11 + $0x78] sm:$0xff] %v851_v11 }
 0x2c3   : > { %865 = vst [vmem:[%s1274_s11 + $0x68] sm:$0xff] %v849_v12 }
 0x2c4 PF: > { %s17_s24 = sadd.s32 1, %s1122_s24  }
 0x2c5   : > { %p14_p4 = scmp.ge.s32.totalorder %s17_s24, 4  }
 0x2c7   :  { %16 = sbr.rel (!%p14_p4) target bundleno = 1 (0x1), region = 78 }

</bundles_post_ra>
